<compile_context>
chip_gen: v6e
topology: v6e:2x2x1
jax: 0.10.0
libtpu: 0.0.40
codegen_flags: <defaults>
</compile_context>

<pallas_src>
from functools import partial

import jax
import jax.numpy as jnp
from jax.experimental import pallas as pl
from jax.experimental.pallas import tpu as pltpu

EPS = 1e-5  # PyTorch nn.LayerNorm default


def _round_up(x, m):
    return (x + m - 1) // m * m


def _patch_expand_kernel(x_ref, w_ref, r_ref, bc_ref, g_ref, b_ref, o_ref, *,
                         wg, n_w, c_in, d, scale):
    """One (row-tile, pixel-group) grid step.

    x_ref : (th, wg*C)       th flattened (B*H) rows, wg pixels of C channels each
    w_ref : (C, Cout+S2)     expand weight^T with S2 folded per-chunk-mean columns
    r_ref : (Cout, S2)       0 or 1/d per-chunk reduce matrix (f32)
    bc_ref: (S2, Cout)       0/1 per-chunk broadcast matrix (f32)
    g_ref : (1, Cout)        LayerNorm gamma tiled over the S2 chunks (f32)
    b_ref : (1, Cout)        LayerNorm beta  tiled over the S2 chunks (f32)
    o_ref : (th, out_w)      fused output rows, columns ordered (p1, w, p2, c);
                             resident across the pixel-group axis — each step writes
                             its own disjoint 128-aligned column ranges.
    """
    s2 = scale * scale
    cout = s2 * d
    pd = scale * d
    th = x_ref.shape[0]
    j = pl.program_id(1)

    x = x_ref[...]
    w_aug = w_ref[...]
    r_mat = r_ref[...]
    bc_mat = bc_ref[...]
    # Hoisted broadcasts (JAX does not CSE broadcast_in_dim) — review item.
    gb = jnp.broadcast_to(g_ref[...], (th, cout))
    bb = jnp.broadcast_to(b_ref[...], (th, cout))

    parts = [[] for _ in range(scale)]          # per-p1 pieces, one per pixel
    for w_loc in range(wg):                     # short, bounded unroll (wg pixels)
        xw = x[:, w_loc * c_in:(w_loc + 1) * c_in]                       # (th, C)
        # One MXU pass yields both the expanded features and the folded chunk means.
        y_aug = jnp.dot(xw, w_aug, preferred_element_type=jnp.float32)   # (th, Cout+S2)
        yw = y_aug[:, :cout]
        mu_g = y_aug[:, cout:]                                           # (th, S2)
        # Thin f32 stat matmuls (no dense (Cout,Cout) a_mat).
        esq_g = jnp.dot(yw * yw, r_mat, preferred_element_type=jnp.float32)  # (th, S2)
        mu = jnp.dot(mu_g, bc_mat, preferred_element_type=jnp.float32)       # (th, Cout)
        esq = jnp.dot(esq_g, bc_mat, preferred_element_type=jnp.float32)     # (th, Cout)
        var = jnp.maximum(esq - mu * mu, 0.0)        # E[y^2] - mu^2, clamped >= 0
        ow = ((yw - mu) * jax.lax.rsqrt(var + EPS) * gb + bb).astype(o_ref.dtype)
        for p1 in range(scale):
            parts[p1].append(ow[:, p1 * pd:(p1 + 1) * pd])

    # Merged stores: one lane-dense slab per p1 per step (instead of 2*W narrow
    # per-(w,p1) stores).  Column offsets are multiples of 128 when wg < W by
    # construction of wg in the wrapper.
    for p1 in range(scale):
        slab = parts[p1][0] if wg == 1 else jnp.concatenate(parts[p1], axis=-1)
        if wg == n_w:
            c0 = p1 * n_w * pd                                   # static offset
            o_ref[:, c0:c0 + wg * pd] = slab
        else:
            col = pl.multiple_of(p1 * (n_w * pd) + j * (wg * pd), 128)
            o_ref[:, pl.ds(col, wg * pd)] = slab


def patch_expand2d(x, w_t, gamma, beta, *, dim_scale=2, block_rows=None,
                   wg_pixels=None, input_buffering=None,
                   vmem_limit_bytes=64 * 1024 * 1024):
    """x: (B,H,W,C) with C = dim_scale*d0;  w_t: (C, dim_scale*C) = Linear weight^T;
    gamma/beta: (d0,).  Returns (B, H*dim_scale, W*dim_scale, d0).

    Pass bf16 x/w_t on v6e/v7x (LayerNorm statistics stay f32 in-kernel).
    block_rows caps the rows of flattened B*H per tile (default 128 f32 / 256 bf16,
    sized for v7x's 64 MiB VMEM; raise it, and set input_buffering=3, on v6e/v5e
    once vmem_limit_bytes allows).
    """
    B, H, W, C = x.shape
    scale = dim_scale
    s2 = scale * scale
    assert C % scale == 0
    d = C // scale
    cout = s2 * d                      # == scale * C
    pd = scale * d
    out_w = scale * W * pd             # fused row width, columns (p1, w, p2, c)
    assert w_t.shape == (C, cout), w_t.shape
    assert gamma.shape == (d,) and beta.shape == (d,)
    assert x.dtype == w_t.dtype, "x and w_t must share a dtype (f32 or bf16)"

    BH = B * H
    itemsize = jnp.dtype(x.dtype).itemsize
    align = 16 if itemsize < 4 else 8          # bf16 packs 2 rows/sublane -> 16

    # ---- pixel-group width: smallest divisor of W whose input and output column
    #      groups are 128-lane aligned (and not too skinny); fall back to full W.
    if wg_pixels is None:
        wg = W
        for cand in range(1, W + 1):
            if W % cand:
                continue
            if (cand * C) % 128 or (cand * pd) % 128:
                continue
            if cand * C < 256 and cand != W:
                continue
            wg = cand
            break
    else:
        wg = wg_pixels
    assert W % wg == 0
    n_j = W // wg

    # ---- row-tile height: target >= 8 row steps (pipelining + 2-TC sharding on
    #      v7x), cap by dtype-dependent budget, shrink if VMEM footprint too big,
    #      then prefer a divisor of BH so no host-side pad/slice is needed.
    cap = block_rows if block_rows is not None else (256 if itemsize < 4 else 128)
    th = max(align, _round_up(pl.cdiv(BH, 8), align))
    th = min(th, max(align, _round_up(cap, align)))

    def _footprint(t):
        w_bytes = C * (cout + s2) * itemsize + (cout * s2 + s2 * cout + 2 * cout) * 4
        return (2 * t * wg * C * itemsize      # double-buffered input tiles
                + 2 * t * out_w * itemsize     # resident output tile + writeback buffer
                + w_bytes                      # resident weights / LN matrices
                + 8 * t * cout * 4)            # f32 temporaries (yw, mu, esq, ...)

    budget = min(vmem_limit_bytes, 64 * 1024 * 1024) * 5 // 8   # leave headroom
    while th > align and _footprint(th) > budget:
        th = max(align, _round_up(th // 2, align))
    if BH % align == 0:                        # snap to a divisor of BH (no pad)
        t = th
        while t > align and BH % t:
            t -= align
        if BH % t == 0:
            th = t
    BH_pad = _round_up(BH, th)

    x2 = x.reshape(BH, W * C)                  # free row-major reshape
    if BH_pad != BH:
        x2 = jnp.pad(x2, ((0, BH_pad - BH), (0, 0)))

    # ---- host-side constant prep (in a real model these are built once).
    cols = jnp.arange(cout) // d               # chunk id of each output column
    grp = jnp.arange(s2)
    r_mat = (cols[:, None] == grp[None, :]).astype(jnp.float32) / d     # (Cout, S2)
    bc_mat = (grp[:, None] == cols[None, :]).astype(jnp.float32)        # (S2, Cout)
    # Fold the per-chunk mean into the expand matmul (review item 1).
    w_mean = (w_t.astype(jnp.float32) @ r_mat).astype(w_t.dtype)        # (C, S2)
    w_aug = jnp.concatenate([w_t, w_mean], axis=1)                      # (C, Cout+S2)
    g_full = jnp.tile(gamma.astype(jnp.float32), s2).reshape(1, cout)
    b_full = jnp.tile(beta.astype(jnp.float32), s2).reshape(1, cout)

    kernel = partial(_patch_expand_kernel, wg=wg, n_w=W, c_in=C, d=d, scale=scale)

    x_spec_kw = {}
    if input_buffering is not None and input_buffering != 2:
        x_spec_kw["pipeline_mode"] = pl.Buffered(input_buffering)   # e.g. 3 on v6e

    y = pl.pallas_call(
        kernel,
        out_shape=jax.ShapeDtypeStruct((BH_pad, out_w), x.dtype),
        grid_spec=pltpu.PrefetchScalarGridSpec(
            num_scalar_prefetch=0,
            grid=(BH_pad // th, n_j),
            in_specs=[
                pl.BlockSpec((th, wg * C), lambda i, j: (i, j), **x_spec_kw),
                pl.BlockSpec((C, cout + s2), lambda i, j: (0, 0)),   # weights, resident
                pl.BlockSpec((cout, s2), lambda i, j: (0, 0)),       # reduce matrix
                pl.BlockSpec((s2, cout), lambda i, j: (0, 0)),       # broadcast matrix
                pl.BlockSpec((1, cout), lambda i, j: (0, 0)),        # gamma (tiled)
                pl.BlockSpec((1, cout), lambda i, j: (0, 0)),        # beta (tiled)
            ],
            # Output block resident across the pixel-group axis: each j writes its
            # disjoint 128-aligned column ranges; HBM writeback happens once per
            # row tile as one lane-dense (th, out_w) slab.
            out_specs=pl.BlockSpec((th, out_w), lambda i, j: (i, 0)),
        ),
        compiler_params=pltpu.CompilerParams(
            dimension_semantics=("parallel", "arbitrary"),
            vmem_limit_bytes=vmem_limit_bytes),
    )(x2, w_aug, r_mat, bc_mat, g_full, b_full)

    if BH_pad != BH:
        y = y[:BH]
    # (BH, out_w) columns are (p1, w, p2, c): pure row-major reshape, no transpose.
    return y.reshape(B, H * scale, W * scale, d)


def _reference(x, w_t, gamma, beta, dim_scale=2):
    B, H, W, C = x.shape
    d = C // dim_scale
    y = x @ w_t                                             # (B,H,W,dim_scale*C)
    y = y.reshape(B, H, W, dim_scale, dim_scale, d)
    y = jnp.transpose(y, (0, 1, 3, 2, 4, 5)).reshape(B, H * dim_scale, W * dim_scale, d)
    mean = jnp.mean(y, axis=-1, keepdims=True)
    var = jnp.mean(jnp.square(y - mean), axis=-1, keepdims=True)
    return (y - mean) * jax.lax.rsqrt(var + EPS) * gamma + beta


if __name__ == "__main__":
    # ctor dim d0 = 64 -> input channels C = 2*d0 = 128 (128-lane aligned), output d0.
    B, H, W = 2, 16, 16
    d0 = 64
    C = 2 * d0
    dim_scale = 2

    key = jax.random.PRNGKey(0)
    kx, kw, kg, kb = jax.random.split(key, 4)

    x = jax.random.normal(kx, (B, H, W, C), dtype=jnp.float32)
    # PyTorch Linear weight is (out, in) = (dim_scale*C, C); kernel consumes its transpose.
    w = jax.random.normal(kw, (dim_scale * C, C), dtype=jnp.float32) * 0.05
    w_t = w.T
    gamma = 1.0 + 0.1 * jax.random.normal(kg, (d0,), dtype=jnp.float32)
    beta = 0.1 * jax.random.normal(kb, (d0,), dtype=jnp.float32)

    ref = _reference(x, w_t, gamma, beta, dim_scale=dim_scale)

    # f32 I/O run.
    out = patch_expand2d(x, w_t, gamma, beta, dim_scale=dim_scale)
    out = jax.block_until_ready(out)
    assert out.shape == (B, H * dim_scale, W * dim_scale, d0), out.shape
    err = float(jnp.max(jnp.abs(out - ref)))
    assert err < 1e-3, err

    # bf16 I/O run (recommended on v6e/v7x; LayerNorm statistics stay f32 in-kernel).
    out_bf16 = patch_expand2d(x.astype(jnp.bfloat16), w_t.astype(jnp.bfloat16),
                              gamma, beta, dim_scale=dim_scale)
    out_bf16 = jax.block_until_ready(out_bf16)
    err_bf16 = float(jnp.max(jnp.abs(out_bf16.astype(jnp.float32) - ref)))
    assert err_bf16 < 1.5e-1, err_bf16

    print("KERNEL_OK")
</pallas_src>

<mosaic_0001>
module attributes {stable_mosaic.version = 11 : i64} {
  func.func @_patch_expand_kernel(%arg0: i32, %arg1: i32, %arg2: memref<8x256xf32, #tpu.memory_space<vmem>>, %arg3: memref<128x260xf32, #tpu.memory_space<vmem>>, %arg4: memref<256x4xf32, #tpu.memory_space<vmem>>, %arg5: memref<4x256xf32, #tpu.memory_space<vmem>>, %arg6: memref<1x256xf32, #tpu.memory_space<vmem>>, %arg7: memref<1x256xf32, #tpu.memory_space<vmem>>, %arg8: memref<8x4096xf32, #tpu.memory_space<vmem>>) attributes {dimension_semantics = [#tpu.dimension_semantics<parallel>, #tpu.dimension_semantics<arbitrary>], iteration_bounds = array<i64: 4, 8>, scalar_prefetch = 0 : i64, scratch_operands = 0 : i64, tpu.core_type = #tpu.core_type<tc>, window_params = [{transform_indices = @transform_0, window_bounds = array<i64: 8, 256>}, {pipeline_mode = #tpu.pipeline_mode<synchronous>, transform_indices = @transform_1, window_bounds = array<i64: 128, 260>}, {pipeline_mode = #tpu.pipeline_mode<synchronous>, transform_indices = @transform_2, window_bounds = array<i64: 256, 4>}, {pipeline_mode = #tpu.pipeline_mode<synchronous>, transform_indices = @transform_3, window_bounds = array<i64: 4, 256>}, {pipeline_mode = #tpu.pipeline_mode<synchronous>, transform_indices = @transform_4, window_bounds = array<i64: 1, 256>}, {pipeline_mode = #tpu.pipeline_mode<synchronous>, transform_indices = @transform_5, window_bounds = array<i64: 1, 256>}, {transform_indices = @transform_6, window_bounds = array<i64: 8, 4096>}]} {
    %c0 = arith.constant 0 : index
    %c0_0 = arith.constant 0 : index
    %0 = vector.load %arg2[%c0, %c0_0] : memref<8x256xf32, #tpu.memory_space<vmem>>, vector<8x256xf32>
    %c0_1 = arith.constant 0 : index
    %c0_2 = arith.constant 0 : index
    %1 = vector.load %arg3[%c0_1, %c0_2] : memref<128x260xf32, #tpu.memory_space<vmem>>, vector<128x260xf32>
    %c0_3 = arith.constant 0 : index
    %c0_4 = arith.constant 0 : index
    %2 = vector.load %arg4[%c0_3, %c0_4] : memref<256x4xf32, #tpu.memory_space<vmem>>, vector<256x4xf32>
    %c0_5 = arith.constant 0 : index
    %c0_6 = arith.constant 0 : index
    %3 = vector.load %arg5[%c0_5, %c0_6] : memref<4x256xf32, #tpu.memory_space<vmem>>, vector<4x256xf32>
    %c0_7 = arith.constant 0 : index
    %c0_8 = arith.constant 0 : index
    %4 = vector.load %arg6[%c0_7, %c0_8] : memref<1x256xf32, #tpu.memory_space<vmem>>, vector<1x256xf32>
    %5 = vector.shape_cast %4 : vector<1x256xf32> to vector<1x256xf32>
    %6 = vector.broadcast %5 : vector<1x256xf32> to vector<8x256xf32>
    %c0_9 = arith.constant 0 : index
    %c0_10 = arith.constant 0 : index
    %7 = vector.load %arg7[%c0_9, %c0_10] : memref<1x256xf32, #tpu.memory_space<vmem>>, vector<1x256xf32>
    %8 = vector.shape_cast %7 : vector<1x256xf32> to vector<1x256xf32>
    %9 = vector.broadcast %8 : vector<1x256xf32> to vector<8x256xf32>
    %10 = vector.extract_strided_slice %0 {offsets = [0, 0], sizes = [8, 128], strides = [1, 1]} : vector<8x256xf32> to vector<8x128xf32>
    %cst = arith.constant dense<0.000000e+00> : vector<8x260xf32>
    %11 = tpu.matmul %10, %1, %cst {dimension_numbers = #tpu.dot_dimension_numbers<[1], [0], [0], [1], [0, 0, 1, 1], [], []>} : vector<8x128xf32>, vector<128x260xf32>, vector<8x260xf32> -> vector<8x260xf32>
    %12 = vector.extract_strided_slice %11 {offsets = [0, 0], sizes = [8, 256], strides = [1, 1]} : vector<8x260xf32> to vector<8x256xf32>
    %13 = vector.extract_strided_slice %11 {offsets = [0, 256], sizes = [8, 4], strides = [1, 1]} : vector<8x260xf32> to vector<8x4xf32>
    %14 = arith.mulf %12, %12 : vector<8x256xf32>
    %cst_11 = arith.constant dense<0.000000e+00> : vector<8x4xf32>
    %15 = tpu.matmul %14, %2, %cst_11 {dimension_numbers = #tpu.dot_dimension_numbers<[1], [0], [0], [1], [0, 0, 1, 1], [], []>} : vector<8x256xf32>, vector<256x4xf32>, vector<8x4xf32> -> vector<8x4xf32>
    %cst_12 = arith.constant dense<0.000000e+00> : vector<8x256xf32>
    %16 = tpu.matmul %13, %3, %cst_12 {dimension_numbers = #tpu.dot_dimension_numbers<[1], [0], [0], [1], [0, 0, 1, 1], [], []>} : vector<8x4xf32>, vector<4x256xf32>, vector<8x256xf32> -> vector<8x256xf32>
    %cst_13 = arith.constant dense<0.000000e+00> : vector<8x256xf32>
    %17 = tpu.matmul %15, %3, %cst_13 {dimension_numbers = #tpu.dot_dimension_numbers<[1], [0], [0], [1], [0, 0, 1, 1], [], []>} : vector<8x4xf32>, vector<4x256xf32>, vector<8x256xf32> -> vector<8x256xf32>
    %18 = arith.mulf %16, %16 : vector<8x256xf32>
    %19 = arith.subf %17, %18 : vector<8x256xf32>
    %cst_14 = arith.constant 0.000000e+00 : f32
    %20 = vector.broadcast %cst_14 : f32 to vector<8x256xf32>
    %21 = arith.maximumf %19, %20 : vector<8x256xf32>
    %22 = arith.subf %12, %16 : vector<8x256xf32>
    %cst_15 = arith.constant 9.99999974E-6 : f32
    %23 = vector.broadcast %cst_15 : f32 to vector<8x256xf32>
    %24 = arith.addf %21, %23 : vector<8x256xf32>
    %25 = math.rsqrt %24 : vector<8x256xf32>
    %26 = arith.mulf %22, %25 : vector<8x256xf32>
    %27 = arith.mulf %26, %6 : vector<8x256xf32>
    %28 = arith.addf %27, %9 : vector<8x256xf32>
    %29 = vector.extract_strided_slice %28 {offsets = [0, 0], sizes = [8, 128], strides = [1, 1]} : vector<8x256xf32> to vector<8x128xf32>
    %30 = vector.extract_strided_slice %28 {offsets = [0, 128], sizes = [8, 128], strides = [1, 1]} : vector<8x256xf32> to vector<8x128xf32>
    %31 = vector.extract_strided_slice %0 {offsets = [0, 128], sizes = [8, 128], strides = [1, 1]} : vector<8x256xf32> to vector<8x128xf32>
    %cst_16 = arith.constant dense<0.000000e+00> : vector<8x260xf32>
    %32 = tpu.matmul %31, %1, %cst_16 {dimension_numbers = #tpu.dot_dimension_numbers<[1], [0], [0], [1], [0, 0, 1, 1], [], []>} : vector<8x128xf32>, vector<128x260xf32>, vector<8x260xf32> -> vector<8x260xf32>
    %33 = vector.extract_strided_slice %32 {offsets = [0, 0], sizes = [8, 256], strides = [1, 1]} : vector<8x260xf32> to vector<8x256xf32>
    %34 = vector.extract_strided_slice %32 {offsets = [0, 256], sizes = [8, 4], strides = [1, 1]} : vector<8x260xf32> to vector<8x4xf32>
    %35 = arith.mulf %33, %33 : vector<8x256xf32>
    %cst_17 = arith.constant dense<0.000000e+00> : vector<8x4xf32>
    %36 = tpu.matmul %35, %2, %cst_17 {dimension_numbers = #tpu.dot_dimension_numbers<[1], [0], [0], [1], [0, 0, 1, 1], [], []>} : vector<8x256xf32>, vector<256x4xf32>, vector<8x4xf32> -> vector<8x4xf32>
    %cst_18 = arith.constant dense<0.000000e+00> : vector<8x256xf32>
    %37 = tpu.matmul %34, %3, %cst_18 {dimension_numbers = #tpu.dot_dimension_numbers<[1], [0], [0], [1], [0, 0, 1, 1], [], []>} : vector<8x4xf32>, vector<4x256xf32>, vector<8x256xf32> -> vector<8x256xf32>
    %cst_19 = arith.constant dense<0.000000e+00> : vector<8x256xf32>
    %38 = tpu.matmul %36, %3, %cst_19 {dimension_numbers = #tpu.dot_dimension_numbers<[1], [0], [0], [1], [0, 0, 1, 1], [], []>} : vector<8x4xf32>, vector<4x256xf32>, vector<8x256xf32> -> vector<8x256xf32>
    %39 = arith.mulf %37, %37 : vector<8x256xf32>
    %40 = arith.subf %38, %39 : vector<8x256xf32>
    %cst_20 = arith.constant 0.000000e+00 : f32
    %41 = vector.broadcast %cst_20 : f32 to vector<8x256xf32>
    %42 = arith.maximumf %40, %41 : vector<8x256xf32>
    %43 = arith.subf %33, %37 : vector<8x256xf32>
    %cst_21 = arith.constant 9.99999974E-6 : f32
    %44 = vector.broadcast %cst_21 : f32 to vector<8x256xf32>
    %45 = arith.addf %42, %44 : vector<8x256xf32>
    %46 = math.rsqrt %45 : vector<8x256xf32>
    %47 = arith.mulf %43, %46 : vector<8x256xf32>
    %48 = arith.mulf %47, %6 : vector<8x256xf32>
    %49 = arith.addf %48, %9 : vector<8x256xf32>
    %50 = vector.extract_strided_slice %49 {offsets = [0, 0], sizes = [8, 128], strides = [1, 1]} : vector<8x256xf32> to vector<8x128xf32>
    %51 = vector.extract_strided_slice %49 {offsets = [0, 128], sizes = [8, 128], strides = [1, 1]} : vector<8x256xf32> to vector<8x128xf32>
    %52 = tpu.concatenate %29, %50 in 1 : vector<8x128xf32>, vector<8x128xf32> -> vector<8x256xf32>
    %c256_i32 = arith.constant 256 : i32
    %53 = arith.muli %arg1, %c256_i32 : i32
    %c0_i32 = arith.constant 0 : i32
    %54 = arith.addi %c0_i32, %53 : i32
    %55 = tpu.assume_multiple %54, 128 : i32
    %c0_22 = arith.constant 0 : index
    %56 = arith.index_cast %55 : i32 to index
    %57 = vector.load %arg8[%c0_22, %56] : memref<8x4096xf32, #tpu.memory_space<vmem>>, vector<8x256xf32>
    tpu.vector_store %arg8[%c0_22, %56], %52 {strides = array<i32>} : memref<8x4096xf32, #tpu.memory_space<vmem>>, vector<8x256xf32>,
    %58 = tpu.concatenate %30, %51 in 1 : vector<8x128xf32>, vector<8x128xf32> -> vector<8x256xf32>
    %c256_i32_23 = arith.constant 256 : i32
    %59 = arith.muli %arg1, %c256_i32_23 : i32
    %c2048_i32 = arith.constant 2048 : i32
    %60 = arith.addi %c2048_i32, %59 : i32
    %61 = tpu.assume_multiple %60, 128 : i32
    %c0_24 = arith.constant 0 : index
    %62 = arith.index_cast %61 : i32 to index
    %63 = vector.load %arg8[%c0_24, %62] : memref<8x4096xf32, #tpu.memory_space<vmem>>, vector<8x256xf32>
    tpu.vector_store %arg8[%c0_24, %62], %58 {strides = array<i32>} : memref<8x4096xf32, #tpu.memory_space<vmem>>, vector<8x256xf32>,
    return
  }
  func.func @transform_0(%arg0: i32, %arg1: i32) -> (i32, i32) {
    %c0_i32 = arith.constant 0 : i32
    return %arg0, %arg1 : i32, i32
  }
  func.func @transform_1(%arg0: i32, %arg1: i32) -> (i32, i32) {
    %c0_i32 = arith.constant 0 : i32
    %c0_i32_0 = arith.constant 0 : i32
    %c0_i32_1 = arith.constant 0 : i32
    return %c0_i32, %c0_i32_0 : i32, i32
  }
  func.func @transform_2(%arg0: i32, %arg1: i32) -> (i32, i32) {
    %c0_i32 = arith.constant 0 : i32
    %c0_i32_0 = arith.constant 0 : i32
    %c0_i32_1 = arith.constant 0 : i32
    return %c0_i32, %c0_i32_0 : i32, i32
  }
  func.func @transform_3(%arg0: i32, %arg1: i32) -> (i32, i32) {
    %c0_i32 = arith.constant 0 : i32
    %c0_i32_0 = arith.constant 0 : i32
    %c0_i32_1 = arith.constant 0 : i32
    return %c0_i32, %c0_i32_0 : i32, i32
  }
  func.func @transform_4(%arg0: i32, %arg1: i32) -> (i32, i32) {
    %c0_i32 = arith.constant 0 : i32
    %c0_i32_0 = arith.constant 0 : i32
    %c0_i32_1 = arith.constant 0 : i32
    return %c0_i32, %c0_i32_0 : i32, i32
  }
  func.func @transform_5(%arg0: i32, %arg1: i32) -> (i32, i32) {
    %c0_i32 = arith.constant 0 : i32
    %c0_i32_0 = arith.constant 0 : i32
    %c0_i32_1 = arith.constant 0 : i32
    return %c0_i32, %c0_i32_0 : i32, i32
  }
  func.func @transform_6(%arg0: i32, %arg1: i32) -> (i32, i32) {
    %c0_i32 = arith.constant 0 : i32
    %c0_i32_0 = arith.constant 0 : i32
    return %arg0, %c0_i32 : i32, i32
  }
}

</mosaic_0001>

<bundles_post_ra>
// kernel: tpu_custom_call.1
= control target key start
LH: loop header
LB: loop body
LE: loop exit
PB: predicated region body
PF: predicated region fallthrough
CT: control target
= control target key end

     0   :  { %11 = vsyncpa [#allocation3], 0  ;;  %s2489_s0 = inlined_call_operand.vmem [shape: f32[32,2048], index: 0, kind: input, shape index: {}]   ;;  %s2490_s1 = inlined_call_operand.vmem [shape: f32[128,260], index: 1, kind: input, shape index: {}]   ;;  %s2491_s2 = inlined_call_operand.vmem [shape: f32[256,4], index: 2, kind: input, shape index: {}]   ;;  %s2492_s3 = inlined_call_operand.vmem [shape: f32[4,256], index: 3, kind: input, shape index: {}]   ;;  %s2493_s4 = inlined_call_operand.vmem [shape: f32[1,256], index: 4, kind: input, shape index: {}]   ;;  %s2494_s5 = inlined_call_operand.vmem [shape: f32[1,256], index: 5, kind: input, shape index: {}]   ;;  %s2495_s6 = inlined_call_operand.hbm [shape: f32[32,4096], index: 6, kind: output, shape index: {}]  }
   0x1   :  { %13 = vsyncpa [#allocation3 + $0x1], 0  ;;  %s1678_s21 = smov 0   ;;  %s1680_s22 = smov 0  }
   0x2   :  { %s1682_s23 = smov 0   ;;  %s1684_s24 = smov 0  }
   0x3   :  { %s1686_s25 = smov 0   ;;  %s1688_s26 = smov 0  }
   0x4   :  { %s1690_s27 = smov 0   ;;  %s1692_s28 = smov 0  }
   0x5 LB: > { %s1260_s29 = sadd.s32 4294967295, %s1638_s28   ;;  %s1261_s30 = sadd.s32 4294967294, %s1638_s28   ;;  %s1638_s28 = sphi %s1692_s28, %s19_s28   ;;  %s1634_s27 = sphi %s1690_s27, %s2583_s27   ;;  %s1630_s26 = sphi %s1688_s26, %s2582_s26   ;;  %s1626_s25 = sphi %s1686_s25, %s2581_s25   ;;  %s1622_s24 = sphi %s1684_s24, %s2580_s24   ;;  %s1618_s23 = sphi %s1682_s23, %s2579_s23   ;;  %s1614_s22 = sphi %s1680_s22, %s2578_s22   ;;  %s1610_s21 = sphi %s1678_s21, %s2577_s21  }
   0x6   : > { %s28_s7 = sadd.s32 1, %s1630_s26  ;;  %s31_s8 = sadd.s32 1, %s1634_s27 }
   0x7   : > { %p29_p0 = scmp.ge.s32.totalorder %s28_s7, 8  ;;  %p181_p1 = scmp.ne.s32.totalorder %s1618_s23, %s1614_s22 }
   0x8   : > { %p182_p2 = scmp.eq.s32.totalorder %s1260_s29, 31  ;;  %p187_p4 = scmp.ne.s32.totalorder %s1614_s22, %s1610_s21 }
   0x9   : > { %s2585_s7 = smov (%p29_p0, %s28_s7), 0  ;;  %s2587_s8 = smov (!%p29_p0, %s31_s8), %s1634_s27 }
   0xa   : > { %p1727_p3 = por %p182_p2, %p181_p1  ;;  %p33_p5 = scmp.ge.s32.totalorder %s2587_s8, 4 }
   0xb   : > { %p188_p6 = scmp.eq.s32.totalorder %s1261_s30, 31  ;;  %p1264_p7 = scmp.ge.s32.totalorder %s1638_s28, 1 }
   0xc   : > { %p234_p8 = scmp.lt.s32.totalorder %s1638_s28, 33  ;;  %s2589_s8 = smov (%p33_p5, %s2587_s8), 0 }
   0xd   : > { %p1737_p9 = por %p188_p6, %p187_p4  ;;  %s168_s11 = ssub.s32 %s1634_s27, %s2589_s8 }
   0xe   : > { %p235_p10 = pnand %p1264_p7, %p234_p8  ;;  %s171_s12 = sadd.s32 1, %s1618_s23 }
   0xf   : > { %p169_p11 = scmp.eq.s32.totalorder %s168_s11, 0 }
  0x10   : > { %238 = sbr.rel (%p235_p10) target bundleno = 1111 (0x457), region = 44 }
  0x11   : > { %s1745_s13 = scalar_select %p169_p11, %s1618_s23, %s171_s12  }
  0x15   : > { %v1750_v0 = vld [vmem:[%s2490_s1 + $0x170] sm:$0xff]  ;;  %v1755_v1 = vld [vmem:[%s2490_s1 + $0x168] sm:$0xff]  ;;  %v1760_v2 = vld [vmem:[%s2490_s1 + $0x178] sm:$0xff]  ;;  %v2496_v3 = vmov 0.0   ;;  %s1266_s11 = sshll.u32 %s1622_s24, 1  ;;  %p269_p12 = scmp.lt.s32.totalorder %s1626_s25, 3 }
  0x16   : > { %385 = vmatprep.subr.mxu0 %v1750_v0  ;;  %1394 = vmatprep.subr.mxu1 %v2496_v3  ;;  %v1767_v4 = vld [vmem:[%s2490_s1 + $0x158] sm:$0xff]  ;;  %v1772_v5 = vld [vmem:[%s2490_s1 + $0x150] sm:$0xff]  ;;  %v1777_v6 = vld [vmem:[%s2490_s1 + $0x160] sm:$0xff]  ;;  %p1902_p13 = scmp.lt.s32.totalorder %s1266_s11, 15  ;;  %vm604_vm0 = vcmask 1043456   ;;  %vm1641_vm1 = vmmov 0  }
  0x17   : > { %386 = vmatpush1.msra.mxu0 %v1755_v1  ;;  %1395 = vmatpush3.msra.mxu1 %v1760_v2  ;;  %v1784_v7 = vld [vmem:[%s2490_s1 + $0x140] sm:$0xff]  ;;  %v1791_v8 = vld [vmem:[%s2490_s1 + $0x138] sm:$0xff]  ;;  %v1796_v9 = vld [vmem:[%s2490_s1 + $0x148] sm:$0xff]  ;;  %s270_s16 = scalar_select %p269_p12, %s1626_s25, 3  ;;  %vm600_vm2 = vcmask 31744  }
  0x18   : > { %387 = vmatprep.subr.mxu0 %v1767_v4  ;;  %1396 = vmatprep.subr.mxu1 %v2496_v3  ;;  %v1803_v10 = vld [vmem:[%s2490_s1 + $0x128] sm:$0xff]  ;;  %v1810_v11 = vld [vmem:[%s2490_s1 + $0x120] sm:$0xff]  ;;  %v1815_v12 = vld [vmem:[%s2490_s1 + $0x130] sm:$0xff]  ;;  %s2591_s11 = smov (!%p1902_p13, %s1266_s11), 15  ;;  %s1289_s17 = sshll.u32 %s1626_s25, 12 }
  0x19   : > { %388 = vmatpush1.msra.mxu0 %v1772_v5  ;;  %1397 = vmatpush3.msra.mxu1 %v1777_v6  ;;  %v1822_v13 = vld [vmem:[%s2490_s1 + $0x110] sm:$0xff]  ;;  %v1829_v14 = vld [vmem:[%s2490_s1 + $0x108] sm:$0xff]  ;;  %v1834_v15 = vld [vmem:[%s2490_s1 + $0x118] sm:$0xff]  ;;  %s1267_s30 = sshll.u32 %s270_s16, 4  ;;  %s1642_s25 = smov [#allocation2]  }
  0x1a   : > { %389 = vmatprep.subr.mxu0 %v1784_v7  ;;  %1398 = vmatprep.subr.mxu1 %v2496_v3  ;;  %v1841_v16 = vld [vmem:[%s2490_s1 + $0xf8] sm:$0xff]  ;;  %v1848_v17 = vld [vmem:[%s2490_s1 + $0xf0] sm:$0xff]  ;;  %v1853_v18 = vld [vmem:[%s2490_s1 + $0x100] sm:$0xff]  ;;  %s274_s20 = sadd.s32 %s1267_s30, %s2591_s11  ;;  %s265_s11 = sand.u32 1, %s1614_s22  }
  0x1b   : > { %390 = vmatpush1.msra.mxu0 %v1791_v8  ;;  %1399 = vmatpush3.msra.mxu1 %v1796_v9  ;;  %v1860_v19 = vld [vmem:[%s2490_s1 + $0xe0] sm:$0xff]  ;;  %v1867_v20 = vld [vmem:[%s2490_s1 + $0xd8] sm:$0xff]  ;;  %v1872_v21 = vld [vmem:[%s2490_s1 + $0xe8] sm:$0xff]  ;;  %s1268_s29 = sshll.u32 %s274_s20, 3  ;;  %s1265_s20 = sshll.u32 %s265_s11, 8 }
  0x1c   : > { %391 = vmatprep.subr.mxu0 %v1803_v10  ;;  %1400 = vmatprep.subr.mxu1 %v2496_v3  ;;  %v1881_v22 = vld [vmem:[%s2490_s1 + $0xc8] sm:$0xff]  ;;  %v1888_v23 = vld [vmem:[%s2490_s1 + $0xc0] sm:$0xff]  ;;  %v1893_v24 = vld [vmem:[%s2490_s1 + $0xd0] sm:$0xff]  ;;  %s2047_s12 = scalar_lea.vmem %s2489_s0, %s1268_s29  ;;  %s1281_s29 = sshll.u32 %s1622_s24, 8 }
  0x1d   : > { %392 = vmatpush1.msra.mxu0 %v1810_v11  ;;  %1401 = vmatpush3.msra.mxu1 %v1815_v12  ;;  %v1900_v25 = vld [vmem:[%s2490_s1 + $0xb0] sm:$0xff]  ;;  %v1911_v26 = vld [vmem:[%s2490_s1 + $0xa8] sm:$0xff]  ;;  %v1916_v27 = vld [vmem:[%s2490_s1 + $0xb8] sm:$0xff]  ;;  %s1152_s30 = sshra.s32 %s1281_s29, 7  ;;  %s2421_s18 = scalar_lea.vmem [#allocation2], %s1265_s20 }
  0x1e   : > { %393 = vmatprep.subr.mxu0 %v1822_v13  ;;  %1402 = vmatprep.subr.mxu1 %v2496_v3  ;;  %v1926_v28 = vld [vmem:[%s2490_s1 + $0x98] sm:$0xff]  ;;  %v1933_v29 = vld [vmem:[%s2490_s1 + $0x90] sm:$0xff]  ;;  %v1938_v30 = vld [vmem:[%s2490_s1 + $0xa0] sm:$0xff]  ;;  %s1282_s16 = sshll.u32 %s1152_s30, 3  ;;  %s1180_s20 = sshll.u32 %s2421_s18, 4  ;;  %s1181_s20 = int_to_ptr.vmem [resolvable:$true] %s1180_s20 }
  0x1f   : > { %394 = vmatpush1.msra.mxu0 %v1829_v14  ;;  %1403 = vmatpush3.msra.mxu1 %v1834_v15  ;;  %v1945_v31 = vld [vmem:[%s2490_s1 + $0x80] sm:$0xff]  ;;  %v1954_v32 = vld [vmem:[%s2490_s1 + $0x78] sm:$0xff]  ;;  %v1959_v33 = vld [vmem:[%s2490_s1 + $0x88] sm:$0xff]  ;;  %s2424_s19 = scalar_lea.vmem %s2421_s18, %s1282_s16 [#allocation2]  ;;  %s2441_s16 = scalar_lea.hbm %s2495_s6, %s1289_s17 }
  0x20   : > { %395 = vmatprep.subr.mxu0 %v1841_v16  ;;  %1404 = vmatprep.subr.mxu1 %v2496_v3  ;;  %v1966_v34 = vld [vmem:[%s2490_s1 + $0x68] sm:$0xff]  ;;  %v1973_v35 = vld [vmem:[%s2490_s1 + $0x60] sm:$0xff]  ;;  %v1978_v36 = vld [vmem:[%s2490_s1 + $0x70] sm:$0xff] }
  0x21   : > { %396 = vmatpush1.msra.mxu0 %v1848_v17  ;;  %1405 = vmatpush3.msra.mxu1 %v1853_v18  ;;  %v1985_v37 = vld [vmem:[%s2490_s1 + $0x50] sm:$0xff]  ;;  %v1992_v38 = vld [vmem:[%s2490_s1 + $0x48] sm:$0xff]  ;;  %v1997_v39 = vld [vmem:[%s2490_s1 + $0x58] sm:$0xff] }
  0x22   : > { %397 = vmatprep.subr.mxu0 %v1860_v19  ;;  %1406 = vmatprep.subr.mxu1 %v2496_v3  ;;  %v2004_v40 = vld [vmem:[%s2490_s1 + $0x38] sm:$0xff]  ;;  %v2011_v41 = vld [vmem:[%s2490_s1 + $0x30] sm:$0xff]  ;;  %v2016_v42 = vld [vmem:[%s2490_s1 + $0x40] sm:$0xff] }
  0x23   : > { %398 = vmatpush1.msra.mxu0 %v1867_v20  ;;  %1407 = vmatpush3.msra.mxu1 %v1872_v21  ;;  %v2023_v43 = vld [vmem:[%s2490_s1 + $0x20] sm:$0xff]  ;;  %v2030_v44 = vld [vmem:[%s2490_s1 + $0x18] sm:$0xff]  ;;  %v2035_v45 = vld [vmem:[%s2490_s1 + $0x28] sm:$0xff] }
  0x24   : > { %399 = vmatprep.subr.mxu0 %v1881_v22  ;;  %1408 = vmatprep.subr.mxu1 %v2496_v3  ;;  %v2042_v46 = vld [vmem:[%s2490_s1 + $0x8] sm:$0xff]  ;;  %v2052_v47 = vld [vmem:[%s2492_s3] sm:$0xff]  ;;  %v2066_v49 = vld [vmem:[%s2490_s1 + $0x10] sm:$0xff] }
  0x25   : > { %400 = vmatpush1.msra.mxu0 %v1888_v23  ;;  %1409 = vmatpush3.msra.mxu1 %v1893_v24  ;;  %v2059_v48 = vld [vmem:[%s2490_s1] sm:$0xff]  ;;  %v2073_v51 = vcombine.high %v2052_v47, %v2052_v47  ;;  %v2080_v52 = vld [vmem:[%s2491_s2 + $0xf8] sm:$0xff]  ;;  %v2093_v54 = vld [vmem:[%s2491_s2 + $0xf0] sm:$0xff] }
  0x26   : > { %401 = vmatprep.subr.mxu0 %v1900_v25  ;;  %1410 = vmatprep.subr.mxu1 %v2496_v3  ;;  %v278_v50 = vld [vmem:[%s2047_s12] sm:$0xff]  ;;  %v2088_v53 = vld [vmem:[%s2491_s2 + $0x78] sm:$0xff]  ;;  %v2099_v55 = vld [vmem:[%s2491_s2 + $0x70] sm:$0xff] }
  0x27   : > { %402 = vmatpush1.msra.mxu0 %v1911_v26  ;;  %1411 = vmatpush3.msra.mxu1 %v1916_v27  ;;  %v2107_v56 = vld [vmem:[%s2491_s2 + $0xe8] sm:$0xff]  ;;  %v2122_v58 = vld [vmem:[%s2491_s2 + $0xe0] sm:$0xff]  ;;  %v2136_v60 = vld [vmem:[%s2491_s2 + $0xd8] sm:$0xff] }
  0x28   : > { %403 = vmatprep.subr.mxu0 %v1926_v28  ;;  %1412 = vmatprep.subr.mxu1 %v2496_v3  ;;  %v2115_v57 = vld [vmem:[%s2491_s2 + $0x68] sm:$0xff]  ;;  %v2130_v59 = vld [vmem:[%s2491_s2 + $0x60] sm:$0xff]  ;;  %2527 = vst [vmem:[#allocation6_spill] sm:$0xff] %v2136_v60  ;;  %v2142_v61 = vld [vmem:[%s2491_s2 + $0x58] sm:$0xff] }
  0x29   : > { %404 = vmatpush1.msra.mxu0 %v1933_v29  ;;  %1413 = vmatpush3.msra.mxu1 %v1938_v30  ;;  %2526 = vst [vmem:[#allocation5_spill] sm:$0xff] %v2130_v59  ;;  %2528 = vst [vmem:[#allocation7_spill] sm:$0xff] %v2142_v61  ;;  %v2148_v62 = vld [vmem:[%s2491_s2 + $0xd0] sm:$0xff] }
  0x2a   : > { %405 = vmatprep.subr.mxu0 %v1945_v31  ;;  %1414 = vmatprep.subr.mxu1 %v2496_v3  ;;  %2529 = vst [vmem:[#allocation8_spill] sm:$0xff] %v2148_v62  ;;  %v2154_v63 = vld [vmem:[%s2491_s2 + $0x50] sm:$0xff] }
  0x2b   : > { %406 = vmatpush1.msra.mxu0 %v1954_v32  ;;  %1415 = vmatpush3.msra.mxu1 %v1959_v33  ;;  %2530 = vst [vmem:[#allocation9_spill] sm:$0xff] %v2154_v63 }
  0x2c   : > { %407 = vmatprep.subr.mxu0 %v1966_v34  ;;  %1416 = vmatprep.subr.mxu1 %v2496_v3 }
  0x2d   : > { %408 = vmatpush1.msra.mxu0 %v1973_v35  ;;  %1417 = vmatpush3.msra.mxu1 %v1978_v36 }
  0x2e   : > { %409 = vmatprep.subr.mxu0 %v1985_v37  ;;  %1418 = vmatprep.subr.mxu1 %v2496_v3 }
  0x2f   : > { %410 = vmatpush1.msra.mxu0 %v1992_v38  ;;  %1419 = vmatpush3.msra.mxu1 %v1997_v39 }
  0x30   : > { %411 = vmatprep.subr.mxu0 %v2004_v40  ;;  %1420 = vmatprep.subr.mxu1 %v2496_v3 }
  0x31   : > { %412 = vmatpush1.msra.mxu0 %v2011_v41  ;;  %1421 = vmatpush3.msra.mxu1 %v2016_v42 }
  0x32   : > { %413 = vmatprep.subr.mxu0 %v2023_v43  ;;  %1422 = vmatprep.subr.mxu1 %v2496_v3 }
  0x33   : > { %414 = vmatpush1.msra.mxu0 %v2030_v44  ;;  %1423 = vmatpush3.msra.mxu1 %v2035_v45 }
  0x34   : > { %415 = vmatprep.subr.mxu0 %v2042_v46  ;;  %1424 = vmatprep.subr.mxu1 %v2496_v3 }
  0x35   : > { %416 = vmatpush1.msra.mxu0 %v2059_v48  ;;  %449 = vmatprep.mubr.f32.mxu0 %v2496_v3 }
  0x36   : > { %1425 = vmatpush3.msra.mxu1 %v2066_v49  ;;  %1426 = vmatprep.mubr.msk.f32.mxu1 %vm1641_vm1, %v2496_v3 }
  0x37   : > { %450 = vmatmul.mubr.f32.vlgmr.msra.gmra.mxu0 %v278_v50  ;;  %1427 = vmatmul.mubr.f32.vlgmr.msra.gmra.mxu1 %v278_v50  ;;  %v2160_v50 = vld [vmem:[%s2491_s2 + $0xc8] sm:$0xff] }
  0x38   : > { %1307 = vmatprep.subr.mxu0 %v2080_v52  ;;  %1269 = vmatprep.subr.msk.mxu1 %vm604_vm0, %v2073_v51  ;;  %2531 = vst [vmem:[#allocation10_spill] sm:$0xff] %v2160_v50 }
  0x39   : > { %1308 = vmatpush3.msra.mxu0 %v2088_v53  ;;  %1270 = vmatpush1.msk.msra.mxu1 %vm604_vm0, %v2052_v47 }
  0x3a   : > { %1309 = vmatprep.subr.mxu0 %v2093_v54  ;;  %673 = vmatprep.mubr.f32.mxu1 %v2496_v3  ;;  %v2166_v3 = vld [vmem:[%s2491_s2 + $0x48] sm:$0xff] }
  0x3b   : > { %1310 = vmatpush3.msra.mxu0 %v2099_v55  ;;  %1272 = vmatprep.subr.msk.mxu1 %vm604_vm0, %v2073_v51  ;;  %2532 = vst [vmem:[#allocation11_spill] sm:$0xff] %v2166_v3 }
  0x3c   : > { %1311 = vmatprep.subr.mxu0 %v2107_v56 }
  0x3d   : > { %1312 = vmatpush3.msra.mxu0 %v2115_v57 }
  0x3e   : > { %1313 = vmatprep.subr.mxu0 %v2122_v58 }
  0x3f   : > { %1314 = vmatpush3.msra.mxu0 %v2130_v59 }
  0x40   : > { %1315 = vmatprep.subr.mxu0 %v2136_v60  ;;  %v2172_v60 = vld [vmem:[%s2491_s2 + $0xc0] sm:$0xff] }
  0x41   : > { %1316 = vmatpush3.msra.mxu0 %v2142_v61  ;;  %2533 = vst [vmem:[#allocation12_spill] sm:$0xff] %v2172_v60  ;;  %v2178_v61 = vld [vmem:[%s2491_s2 + $0x40] sm:$0xff] }
  0x42   : > { %1317 = vmatprep.subr.mxu0 %v2148_v62  ;;  %2534 = vst [vmem:[#allocation13_spill] sm:$0xff] %v2178_v61  ;;  %v2184_v62 = vld [vmem:[%s2491_s2 + $0xb8] sm:$0xff] }
  0x43   : > { %1318 = vmatpush3.msra.mxu0 %v2154_v63  ;;  %2535 = vst [vmem:[#allocation14_spill] sm:$0xff] %v2184_v62  ;;  %v2190_v63 = vld [vmem:[%s2491_s2 + $0x38] sm:$0xff] }
  0x44   : > { %1319 = vmatprep.subr.mxu0 %v2160_v50  ;;  %2536 = vst [vmem:[#allocation15_spill] sm:$0xff] %v2190_v63  ;;  %v2196_v50 = vld [vmem:[%s2491_s2 + $0xb0] sm:$0xff] }
  0x45   : > { %1320 = vmatpush3.msra.mxu0 %v2166_v3  ;;  %2537 = vst [vmem:[#allocation16_spill] sm:$0xff] %v2196_v50  ;;  %v2202_v3 = vld [vmem:[%s2491_s2 + $0x30] sm:$0xff] }
  0x46   : > { %1321 = vmatprep.subr.mxu0 %v2172_v60  ;;  %2538 = vst [vmem:[#allocation17_spill] sm:$0xff] %v2202_v3  ;;  %v2208_v60 = vld [vmem:[%s2491_s2 + $0xa8] sm:$0xff] }
  0x47   : > { %1322 = vmatpush3.msra.mxu0 %v2178_v61  ;;  %2539 = vst [vmem:[#allocation18_spill] sm:$0xff] %v2208_v60  ;;  %v2214_v61 = vld [vmem:[%s2491_s2 + $0x28] sm:$0xff] }
  0x48   : > { %1323 = vmatprep.subr.mxu0 %v2184_v62  ;;  %2540 = vst [vmem:[#allocation19_spill] sm:$0xff] %v2214_v61  ;;  %v2220_v62 = vld [vmem:[%s2491_s2 + $0xa0] sm:$0xff] }
  0x49   : > { %1324 = vmatpush3.msra.mxu0 %v2190_v63  ;;  %2541 = vst [vmem:[#allocation20_spill] sm:$0xff] %v2220_v62  ;;  %v2226_v63 = vld [vmem:[%s2491_s2 + $0x20] sm:$0xff] }
  0x4a   : > { %1325 = vmatprep.subr.mxu0 %v2196_v50  ;;  %2542 = vst [vmem:[#allocation21_spill] sm:$0xff] %v2226_v63  ;;  %v2232_v50 = vld [vmem:[%s2491_s2 + $0x98] sm:$0xff] }
  0x4b   : > { %1326 = vmatpush3.msra.mxu0 %v2202_v3  ;;  %2543 = vst [vmem:[#allocation22_spill] sm:$0xff] %v2232_v50  ;;  %v2238_v3 = vld [vmem:[%s2491_s2 + $0x18] sm:$0xff] }
  0x4c   : > { %1327 = vmatprep.subr.mxu0 %v2208_v60  ;;  %2544 = vst [vmem:[#allocation23_spill] sm:$0xff] %v2238_v3 }
  0x4d   : > { %1328 = vmatpush3.msra.mxu0 %v2214_v61  ;;  %v2246_v61 = vld [vmem:[%s2491_s2 + $0x90] sm:$0xff] }
  0x4e   : > { %1329 = vmatprep.subr.mxu0 %v2220_v62  ;;  %2545 = vst [vmem:[#allocation24_spill] sm:$0xff] %v2246_v61  ;;  %v2252_v62 = vld [vmem:[%s2491_s2 + $0x10] sm:$0xff] }
  0x4f   : > { %1330 = vmatpush3.msra.mxu0 %v2226_v63  ;;  %2546 = vst [vmem:[#allocation25_spill] sm:$0xff] %v2252_v62 }
  0x50   : > { %1331 = vmatprep.subr.mxu0 %v2232_v50  ;;  %v2258_v50 = vld [vmem:[%s2491_s2 + $0x88] sm:$0xff] }
  0x51   : > { %1332 = vmatpush3.msra.mxu0 %v2238_v3  ;;  %2547 = vst [vmem:[#allocation26_spill] sm:$0xff] %v2258_v50  ;;  %v2264_v3 = vld [vmem:[%s2491_s2 + $0x8] sm:$0xff] }
  0x52   : > { %1333 = vmatprep.subr.mxu0 %v2246_v61  ;;  %2548 = vst [vmem:[#allocation27_spill] sm:$0xff] %v2264_v3  ;;  %v2270_v61 = vld [vmem:[%s2491_s2 + $0x80] sm:$0xff] }
  0x53   : > { %1334 = vmatpush3.msra.mxu0 %v2252_v62  ;;  %2549 = vst [vmem:[#allocation28_spill] sm:$0xff] %v2270_v61  ;;  %v2275_v62 = vld [vmem:[%s2491_s2] sm:$0xff] }
  0x54   : > { %1335 = vmatprep.subr.mxu0 %v2258_v50  ;;  %2550 = vst [vmem:[#allocation29_spill] sm:$0xff] %v2275_v62  ;;  %v2551_v50 = vmov 0.0  }
  0x55   : > { %1336 = vmatpush3.msra.mxu0 %v2264_v3 }
  0x56   : > { %1337 = vmatprep.subr.mxu0 %v2270_v61 }
  0x57   : > { %1338 = vmatpush3.msra.mxu0 %v2275_v62 }
  0x58   : > { %1429 = vmatprep.subr.mxu0 %v2551_v50 }
  0xf7   : > { %v2280_v63 = vpop.f32.mrf.mxu0  ;;  %v522_v3 = vpop.f32.mrf.mxu1 }
  0xf8   : > { %1271 = vmatmul.mubr.msk.f32.vlgmr.msra.gmra.mxu1 %vm600_vm2, %v522_v3  ;;  %v526_v62 = vmul.f32 %v2280_v63, %v2280_v63 }
  0xf9   : > { %v2283_v60 = vpop.f32.mrf.mxu0  ;;  %v1428_v59 = vpop.f32.mrf.mxu1  ;;  %1273 = vmatpush1.msk.msra.mxu1 %vm604_vm0, %v2052_v47  ;;  %747 = vmatprep.mubr.f32.mxu1 %v2551_v50 }
  0xfa   : > { %v527_v61 = vmul.f32 %v2283_v60, %v2283_v60  ;;  %772 = vmatprep.subr.mxu1 %v1750_v0  ;;  %v279_v0 = vld [vmem:[%s2047_s12 + $0x8] sm:$0xff]  ;;  %s1158_s12 = sadd.s32 2048, %s1281_s29 }
  0xfb   : > { %s1159_s14 = sshra.s32 %s1158_s12, 7  ;;  %s1166_s12 = scalar_lea.sflag [#allocation3], %s265_s11 }
  0xfc   : > { %592 = vmatprep.mubr.f32.mxu0 %v527_v61  ;;  %s1283_s15 = sshll.u32 %s1159_s14, 3  ;;  %s1546_s14 = scalar_lea.vmem %s1181_s20, 4096 }
  0xfd   : > { %593 = vmatmul.mubr.f32.vlgmr.msra.gmra.mxu0 %v526_v62  ;;  %s1162_s30 = scalar_lea.vmem %s2421_s18, %s1283_s15 [#allocation2]  ;;  %p1547_p0 = scmp.ne.s32.totalorder %s1181_s20, %s1546_s14 }
  0xfe   : > { %1430 = vmatpush3.msra.mxu0 %v1760_v2  ;;  %1461 = vmatprep.mubr.msk.f32.mxu0 %vm1641_vm1, %v2551_v50  ;;  %s1550_s18 = sshll.u32 %s1642_s25, 4  ;;  %s1551_s18 = int_to_ptr.vmem [resolvable:$false] %s1550_s18 }
  0xff   : > { %1431 = vmatprep.subr.mxu0 %v2551_v50  ;;  %p1548_p1 = pnand %p1547_p0, %p1727_p3  ;;  %s1552_s15 = scalar_lea.vmem %s1551_s18, 8192 }
 0x100   : > { %1432 = vmatpush3.msra.mxu0 %v1777_v6  ;;  %p1553_p4 = scmp.lt.s32.totalorder %s1181_s20, %s1551_s18  ;;  %p1554_p5 = scmp.lt.s32.totalorder %s1552_s15, %s1546_s14 }
 0x101   : > { %1433 = vmatprep.subr.mxu0 %v2551_v50  ;;  %p1549_p2 = pneg %p1548_p1 }
 0x102   : > { %1434 = vmatpush3.msra.mxu0 %v1796_v9  ;;  %v2555_v9 = vld [vmem:[#allocation8_spill] sm:$0xff]  ;;  %p1555_p6 = por %p1554_p5, %p1553_p4 }
 0x103   : > { %1435 = vmatprep.subr.mxu0 %v2551_v50 }
 0x104   : > { %1436 = vmatpush3.msra.mxu0 %v1815_v12  ;;  %v2558_v12 = vld [vmem:[#allocation11_spill] sm:$0xff]  ;;  %p1556_p7 = pnand %p1555_p6, %p1549_p2 }
 0x105   : > { %1437 = vmatprep.subr.mxu0 %v2551_v50 }
 0x106   : > { %1438 = vmatpush3.msra.mxu0 %v1834_v15  ;;  %v2561_v15 = vld [vmem:[#allocation14_spill] sm:$0xff] }
 0x107   : > { %1439 = vmatprep.subr.mxu0 %v2551_v50 }
 0x108   : > { %1440 = vmatpush3.msra.mxu0 %v1853_v18  ;;  %v2564_v18 = vld [vmem:[#allocation17_spill] sm:$0xff] }
 0x109   : > { %1441 = vmatprep.subr.mxu0 %v2551_v50 }
 0x10a   : > { %1442 = vmatpush3.msra.mxu0 %v1872_v21  ;;  %v2567_v21 = vld [vmem:[#allocation20_spill] sm:$0xff] }
 0x10b   : > { %1443 = vmatprep.subr.mxu0 %v2551_v50 }
 0x10c   : > { %1444 = vmatpush3.msra.mxu0 %v1893_v24  ;;  %v2570_v24 = vld [vmem:[#allocation23_spill] sm:$0xff] }
 0x10d   : > { %1445 = vmatprep.subr.mxu0 %v2551_v50 }
 0x10e   : > { %1446 = vmatpush3.msra.mxu0 %v1916_v27  ;;  %v2573_v27 = vld [vmem:[#allocation26_spill] sm:$0xff] }
 0x10f   : > { %1447 = vmatprep.subr.mxu0 %v2551_v50 }
 0x110   : > { %1448 = vmatpush3.msra.mxu0 %v1938_v30  ;;  %v2576_v30 = vld [vmem:[#allocation29_spill] sm:$0xff] }
 0x111   : > { %1449 = vmatprep.subr.mxu0 %v2551_v50 }
 0x112   : > { %1450 = vmatpush3.msra.mxu0 %v1959_v33 }
 0x113   : > { %1451 = vmatprep.subr.mxu0 %v2551_v50 }
 0x114   : > { %1452 = vmatpush3.msra.mxu0 %v1978_v36  ;;  %v373_v36 = vld [vmem:[%s2494_s5] sm:$0x3] }
 0x115   : > { %1453 = vmatprep.subr.mxu0 %v2551_v50 }
 0x116   : > { %1454 = vmatpush3.msra.mxu0 %v1997_v39 }
 0x117   : > { %1455 = vmatprep.subr.mxu0 %v2551_v50 }
 0x118   : > { %1456 = vmatpush3.msra.mxu0 %v2016_v42 }
 0x119   : > { %1457 = vmatprep.subr.mxu0 %v2551_v50 }
 0x11a   : > { %1458 = vmatpush3.msra.mxu0 %v2035_v45 }
 0x11b   : > { %1459 = vmatprep.subr.mxu0 %v2551_v50 }
 0x11c   : > { %1460 = vmatpush3.msra.mxu0 %v2066_v49 }
 0x11d   : > { %1462 = vmatmul.mubr.f32.vlgmr.msra.gmra.mxu0 %v279_v0  ;;  %1275 = vmatprep.subr.msk.mxu0 %vm604_vm0, %v2073_v51 }
 0x11e   : > { %1276 = vmatpush1.msk.msra.mxu0 %vm604_vm0, %v2052_v47  ;;  %1052 = vmatprep.mubr.f32.mxu0 %v2551_v50 }
 0x11f   : > { %1278 = vmatprep.subr.msk.mxu0 %vm604_vm0, %v2073_v51 }
 0x1bd   : > { %v1339_v2 = vpop.f32.mrf.mxu0 }
 0x1bf   : > { %v1340_v3 = vpop.f32.mrf.mxu0 }
 0x1c0   : > { %v1341_v6 = vadd.f32 %v1340_v3, %v1339_v2 }
 0x1c2   : > { %1274 = vmatmul.mubr.msk.f32.vlgmr.msra.gmra.mxu1 %vm600_vm2, %v1341_v6 }
 0x1c3   : > { %773 = vmatpush1.msra.mxu1 %v1755_v1  ;;  %836 = vmatprep.mubr.f32.mxu1 %v2551_v50 }
 0x1c4   : > { %774 = vmatprep.subr.mxu1 %v1767_v4 }
 0x1c5   : > { %775 = vmatpush1.msra.mxu1 %v1772_v5  ;;  %v2552_v5 = vld [vmem:[#allocation5_spill] sm:$0xff] }
 0x1c6   : > { %776 = vmatprep.subr.mxu1 %v1784_v7  ;;  %v2553_v7 = vld [vmem:[#allocation6_spill] sm:$0xff] }
 0x1c7   : > { %777 = vmatpush1.msra.mxu1 %v1791_v8  ;;  %v2554_v8 = vld [vmem:[#allocation7_spill] sm:$0xff] }
 0x1c8   : > { %778 = vmatprep.subr.mxu1 %v1803_v10  ;;  %v2556_v10 = vld [vmem:[#allocation9_spill] sm:$0xff] }
 0x1c9   : > { %779 = vmatpush1.msra.mxu1 %v1810_v11  ;;  %v2557_v11 = vld [vmem:[#allocation10_spill] sm:$0xff] }
 0x1ca   : > { %780 = vmatprep.subr.mxu1 %v1822_v13  ;;  %v2559_v13 = vld [vmem:[#allocation12_spill] sm:$0xff] }
 0x1cb   : > { %781 = vmatpush1.msra.mxu1 %v1829_v14  ;;  %v2560_v14 = vld [vmem:[#allocation13_spill] sm:$0xff] }
 0x1cc   : > { %782 = vmatprep.subr.mxu1 %v1841_v16  ;;  %v2562_v16 = vld [vmem:[#allocation15_spill] sm:$0xff] }
 0x1cd   : > { %783 = vmatpush1.msra.mxu1 %v1848_v17  ;;  %v2563_v17 = vld [vmem:[#allocation16_spill] sm:$0xff] }
 0x1ce   : > { %784 = vmatprep.subr.mxu1 %v1860_v19  ;;  %v2565_v19 = vld [vmem:[#allocation18_spill] sm:$0xff] }
 0x1cf   : > { %785 = vmatpush1.msra.mxu1 %v1867_v20  ;;  %v2566_v20 = vld [vmem:[#allocation19_spill] sm:$0xff] }
 0x1d0   : > { %786 = vmatprep.subr.mxu1 %v1881_v22  ;;  %v2568_v22 = vld [vmem:[#allocation21_spill] sm:$0xff] }
 0x1d1   : > { %787 = vmatpush1.msra.mxu1 %v1888_v23  ;;  %v2569_v23 = vld [vmem:[#allocation22_spill] sm:$0xff] }
 0x1d2   : > { %788 = vmatprep.subr.mxu1 %v1900_v25  ;;  %v2571_v25 = vld [vmem:[#allocation24_spill] sm:$0xff] }
 0x1d3   : > { %789 = vmatpush1.msra.mxu1 %v1911_v26  ;;  %v2572_v26 = vld [vmem:[#allocation25_spill] sm:$0xff] }
 0x1d4   : > { %790 = vmatprep.subr.mxu1 %v1926_v28  ;;  %v2574_v28 = vld [vmem:[#allocation27_spill] sm:$0xff] }
 0x1d5   : > { %791 = vmatpush1.msra.mxu1 %v1933_v29  ;;  %v2575_v29 = vld [vmem:[#allocation28_spill] sm:$0xff] }
 0x1d6   : > { %792 = vmatprep.subr.mxu1 %v1945_v31  ;;  %v363_v31 = vlaneseq }
 0x1d7   : > { %793 = vmatpush1.msra.mxu1 %v1954_v32 }
 0x1d8   : > { %794 = vmatprep.subr.mxu1 %v1966_v34  ;;  %v364_v32 = vshrl.u32 %v363_v31, 7  ;;  %v361_v34 = vld [vmem:[%s2493_s4] sm:$0x3] }
 0x1d9   : > { %795 = vmatpush1.msra.mxu1 %v1973_v35 }
 0x1da   : > { %796 = vmatprep.subr.mxu1 %v1985_v37  ;;  %v369_v33 = vsub.s32 1, %v364_v32  ;;  %v365_v51 = vsub.s32 0, %v364_v32 }
 0x1db   : > { %797 = vmatpush1.msra.mxu1 %v1992_v38  ;;  %v675_v38 = vpop.f32.mrf.mxu1 }
 0x1dc   : > { %798 = vmatprep.subr.mxu1 %v2004_v40  ;;  %v2406_v35 = vrot.slane %v361_v34, %v369_v33  ;;  %v2411_v37 = vrot.slane %v373_v36, %v369_v33  ;;  %v754_v40 = vmul.f32 %v675_v38, %v675_v38 }
 0x1dd   : > { %799 = vmatpush1.msra.mxu1 %v2011_v41  ;;  %v909_v1 = vpop.f32.mrf.mxu0  ;;  %v677_v39 = vpop.f32.mrf.mxu1 }
 0x1de   : > { %800 = vmatprep.subr.mxu1 %v2023_v43  ;;  %1277 = vmatmul.mubr.msk.f32.vlgmr.msra.gmra.mxu0 %vm600_vm2, %v909_v1  ;;  %v755_v42 = vmul.f32 %v677_v39, %v677_v39 }
 0x1df   : > { %801 = vmatpush1.msra.mxu1 %v2030_v44  ;;  %v1463_v4 = vpop.f32.mrf.mxu0  ;;  %1279 = vmatpush1.msk.msra.mxu0 %vm604_vm0, %v2052_v47 }
 0x1e0   : > { %802 = vmatprep.subr.mxu1 %v2042_v46  ;;  %1126 = vmatprep.mubr.f32.mxu0 %v2551_v50 }
 0x1e1   : > { %803 = vmatpush1.msra.mxu1 %v2059_v48 }
 0x1e2   : > { %837 = vmatmul.mubr.f32.vlgmr.msra.gmra.mxu1 %v279_v0  ;;  %1359 = vmatprep.subr.mxu1 %v2080_v52  ;;  %v760_v52 = vsub.f32 %v2280_v63, %v675_v38 }
 0x1e3   : > { %1360 = vmatpush3.msra.mxu1 %v2088_v53  ;;  %v366_v53 = vrot.slane %v361_v34, %v365_v51 }
 0x1e4   : > { %1361 = vmatprep.subr.mxu1 %v2093_v54 }
 0x1e5   : > { %1362 = vmatpush3.msra.mxu1 %v2099_v55  ;;  %v761_v55 = vsub.f32 %v2283_v60, %v677_v39 }
 0x1e6   : > { %1363 = vmatprep.subr.mxu1 %v2107_v56 }
 0x1e7   : > { %1364 = vmatpush3.msra.mxu1 %v2115_v57  ;;  %v378_v57 = vrot.slane %v373_v36, %v365_v51 }
 0x1e8   : > { %1365 = vmatprep.subr.mxu1 %v2122_v58 }
 0x1e9   : > { %1366 = vmatpush3.msra.mxu1 %v2552_v5 }
 0x1ea   : > { %1367 = vmatprep.subr.mxu1 %v2553_v7 }
 0x1eb   : > { %1368 = vmatpush3.msra.mxu1 %v2554_v8 }
 0x1ec   : > { %1369 = vmatprep.subr.mxu1 %v2555_v9 }
 0x1ed   : > { %1370 = vmatpush3.msra.mxu1 %v2556_v10 }
 0x1ee   : > { %1371 = vmatprep.subr.mxu1 %v2557_v11 }
 0x1ef   : > { %1372 = vmatpush3.msra.mxu1 %v2558_v12 }
 0x1f0   : > { %1373 = vmatprep.subr.mxu1 %v2559_v13 }
 0x1f1   : > { %1374 = vmatpush3.msra.mxu1 %v2560_v14 }
 0x1f2   : > { %1375 = vmatprep.subr.mxu1 %v2561_v15 }
 0x1f3   : > { %1376 = vmatpush3.msra.mxu1 %v2562_v16 }
 0x1f4   : > { %1377 = vmatprep.subr.mxu1 %v2563_v17 }
 0x1f5   : > { %1378 = vmatpush3.msra.mxu1 %v2564_v18 }
 0x1f6   : > { %1379 = vmatprep.subr.mxu1 %v2565_v19 }
 0x1f7   : > { %1380 = vmatpush3.msra.mxu1 %v2566_v20 }
 0x1f8   : > { %1381 = vmatprep.subr.mxu1 %v2567_v21 }
 0x1f9   : > { %1382 = vmatpush3.msra.mxu1 %v2568_v22 }
 0x1fa   : > { %1383 = vmatprep.subr.mxu1 %v2569_v23 }
 0x1fb   : > { %1384 = vmatpush3.msra.mxu1 %v2570_v24 }
 0x1fc   : > { %1385 = vmatprep.subr.mxu1 %v2571_v25 }
 0x1fd   : > { %1386 = vmatpush3.msra.mxu1 %v2572_v26 }
 0x1fe   : > { %1387 = vmatprep.subr.mxu1 %v2573_v27 }
 0x1ff   : > { %1388 = vmatpush3.msra.mxu1 %v2574_v28 }
 0x200   : > { %1389 = vmatprep.subr.mxu1 %v2575_v29 }
 0x201   : > { %1390 = vmatpush3.msra.mxu1 %v2576_v30 }
 0x282   : > { %v749_v41 = vpop.f32.mrf.mxu1 }
 0x283   : > { %v756_v43 = vsub.f32 %v749_v41, %v754_v40 }
 0x284   : > { %v751_v44 = vpop.f32.mrf.mxu1 }
 0x285   : > { %v758_v45 = vmax.f32 %v756_v43, 0.0  ;;  %v757_v46 = vsub.f32 %v751_v44, %v755_v42 }
 0x287   : > { %v762_v47 = vadd.f32 1e-05, %v758_v45  ;;  %v759_v48 = vmax.f32 %v757_v46, 0.0 }
 0x289   : > { %1538 = vrsqrt.f32 %v762_v47  ;;  %v763_v49 = vadd.f32 1e-05, %v759_v48 }
 0x28b   : > { %1540 = vrsqrt.f32 %v763_v49 }
 0x296   : > { %v1539_v54 = vpop.eup %1538 }
 0x297   : > { %v766_v56 = vmul.f32 %v1539_v54, %v760_v52 }
 0x298   : > { %v1541_v58 = vpop.eup %1540 }
 0x299   : > { %v767_v59 = vmul.f32 %v1541_v58, %v761_v55  ;;  %v768_v61 = vmul.f32 %v766_v56, %v366_v53 }
 0x29b   : > { %v769_v62 = vmul.f32 %v767_v59, %v2406_v35  ;;  %v770_v50 = vadd.f32 %v768_v61, %v378_v57 }
 0x29d   : > { %v771_v63 = vadd.f32 %v769_v62, %v2411_v37  ;;  %1156 = vst [vmem:[%s2424_s19] sm:$0xff] %v770_v50 }
 0x29e   : > { %v1054_v5 = vpop.f32.mrf.mxu0 }
 0x29f   : > { %v1133_v8 = vmul.f32 %v1054_v5, %v1054_v5 }
 0x2a0   : > { %v1056_v7 = vpop.f32.mrf.mxu0 }
 0x2a1   : > { %v1134_v10 = vmul.f32 %v1056_v7, %v1056_v7 }
 0x2a2   : > { %v838_v0 = vpop.f32.mrf.mxu1 }
 0x2a3   : > { %v913_v3 = vmul.f32 %v838_v0, %v838_v0  ;;  %v1139_v18 = vsub.f32 %v838_v0, %v1054_v5 }
 0x2a4   : > { %v840_v60 = vpop.f32.mrf.mxu1 }
 0x2a5   : > { %v914_v2 = vmul.f32 %v840_v60, %v840_v60  ;;  %v1140_v20 = vsub.f32 %v840_v60, %v1056_v7 }
 0x2a7   : > { %979 = vmatprep.mubr.f32.mxu1 %v914_v2 }
 0x2a8   : > { %980 = vmatmul.mubr.f32.vlgmr.msra.gmra.mxu1 %v913_v3 }
 0x368   : > { %v1391_v6 = vpop.f32.mrf.mxu1 }
 0x36a   : > { %v1392_v1 = vpop.f32.mrf.mxu1 }
 0x36b   : > { %v1393_v4 = vadd.f32 %v1392_v1, %v1391_v6 }
 0x36d   : > { %1280 = vmatmul.mubr.msk.f32.vlgmr.msra.gmra.mxu0 %vm600_vm2, %v1393_v4 }
 0x42d   : > { %v1128_v9 = vpop.f32.mrf.mxu0 }
 0x42e   : > { %v1135_v11 = vsub.f32 %v1128_v9, %v1133_v8 }
 0x42f   : > { %v1130_v12 = vpop.f32.mrf.mxu0 }
 0x430   : > { %v1137_v13 = vmax.f32 %v1135_v11, 0.0  ;;  %v1136_v14 = vsub.f32 %v1130_v12, %v1134_v10 }
 0x432   : > { %v1141_v15 = vadd.f32 1e-05, %v1137_v13  ;;  %v1138_v16 = vmax.f32 %v1136_v14, 0.0 }
 0x434   : > { %1542 = vrsqrt.f32 %v1141_v15  ;;  %v1142_v17 = vadd.f32 1e-05, %v1138_v16 }
 0x436   : > { %1544 = vrsqrt.f32 %v1142_v17 }
 0x441   : > { %v1543_v19 = vpop.eup %1542 }
 0x442   : > { %v1145_v21 = vmul.f32 %v1543_v19, %v1139_v18 }
 0x443   : > { %v1545_v22 = vpop.eup %1544 }
 0x444   : > { %v1146_v23 = vmul.f32 %v1545_v22, %v1140_v20  ;;  %v1147_v24 = vmul.f32 %v1145_v21, %v366_v53 }
 0x446   : > { %v1148_v25 = vmul.f32 %v1146_v23, %v2406_v35  ;;  %v1149_v26 = vadd.f32 %v1147_v24, %v378_v57 }
 0x448   : > { %v1150_v27 = vadd.f32 %v1148_v25, %v2411_v37  ;;  %1157 = vst [vmem:[%s2424_s19 + $0x8] sm:$0xff] %v1149_v26 }
 0x449   : > { %1163 = vst [vmem:[%s1162_s30] sm:$0xff] %v771_v63 }
 0x44a   : > { %1164 = vst [vmem:[%s1162_s30 + $0x8] sm:$0xff] %v1150_v27 }
 0x44b   : > { %1559 = shalt.err (!%p1556_p7)
}
 0x44c   : > { %s1560_s19 = scalar_lea.hbm %s2441_s16, 4096  ;;  %s1564_s30 = scalar_lea.hbm %s2495_s6, 16384 }
 0x44d   : > { %p1561_p8 = scmp.ne.s32.totalorder %s2441_s16, %s1560_s19  ;;  %p1565_p12 = scmp.lt.s32.totalorder %s2441_s16, %s2495_s6 }
 0x44e   : > { %p1566_p13 = scmp.lt.s32.totalorder %s1564_s30, %s1560_s19 }
 0x44f   : > { %p1562_p10 = pnand %p1561_p8, %p1727_p3 }
 0x450   : > { %p1567_p0 = por %p1566_p13, %p1565_p12 }
 0x451   : > { %p1563_p11 = pneg %p1562_p10 }
 0x453   : > { %p1568_p1 = pnand %p1567_p0, %p1563_p11 }
 0x455   : > { %1571 = shalt.err (!%p1568_p1)
}
 0x456   : > { %1464 = dma.vmem_to_hbm [thread:$0]  (%p1727_p3), %s1181_s20, 4096, %s2441_s16, %s1166_s12  }
 0x457 PF: > { %p1470_p2 = scmp.ge.s32.totalorder %s1638_s28, 2  ;;  %s1192_s14 = sand.u32 1, %s1610_s21  }
 0x458   : > { %s1193_s25 = scalar_lea.sflag [#allocation3], %s1192_s14 }
 0x459   : > { %p1467_p4 = pnand %p1470_p2, %p1737_p9 }
 0x45b   : > { %p1468_p5 = pneg %p1467_p4 }
 0x45d   : > { %1605 = dma.done.wait (%p1468_p5), %s1193_s25, 4096  }
 0x45e   : > { %1607 = vsyncadd (%p1468_p5), %s1193_s25, 4294963200  ;;  %s19_s28 = sadd.s32 1, %s1638_s28   ;;  %s2577_s21 = smov %s1614_s22 }
 0x45f   : > { %p16_p6 = scmp.ge.s32.totalorder %s19_s28, 34   ;;  %s2578_s22 = smov %s1618_s23 }
 0x460   : > { %s2579_s23 = smov %s1745_s13  ;;  %s2580_s24 = smov %s1630_s26 }
 0x461   : > { %s2581_s25 = smov %s1634_s27  ;;  %s2582_s26 = smov %s2585_s7 }
 0x462   : > { %s2583_s27 = smov %s2589_s8  ;;  %18 = sbr.rel (!%p16_p6) target bundleno = 5 (0x5), region = 81 }
 0x467   :  { %1198 = vsyncpa [#allocation3], 1 }
 0x468   :  { %1200 = vsyncpa [#allocation3 + $0x1], 1 }

</bundles_post_ra>
